<compile_context>
chip_gen: v5e
topology: v5e:2x2
jax: 0.10.0
libtpu: 0.0.40
codegen_flags: <defaults>
</compile_context>

<pallas_src>
import math

import jax
import jax.numpy as jnp
from jax.experimental import pallas as pl
from jax.experimental.pallas import tpu as pltpu


def _build_pe(d_model: int, max_len: int) -> jnp.ndarray:
    """Deterministic sinusoidal table, identical to the PyTorch __init__."""
    position = jnp.arange(max_len, dtype=jnp.float32)[:, None]            # (L, 1)
    div_term = jnp.exp(
        jnp.arange(0, d_model, 2, dtype=jnp.float32)
        * (-math.log(10000.0) / d_model)
    )                                                                     # (D/2,)
    angles = position * div_term                                          # (L, D/2)
    pe = jnp.zeros((max_len, d_model), dtype=jnp.float32)
    pe = pe.at[:, 0::2].set(jnp.sin(angles))
    pe = pe.at[:, 1::2].set(jnp.cos(angles))
    return pe[None]                                                       # (1, L, D)


def _pos_add_kernel(pe_ref, f_ref, a1_ref, a2_ref, fo_ref, a1o_ref, a2o_ref):
    # pe is pre-scaled by 1/sqrt(d_model) and pre-cast to the activation dtype.
    enc = pe_ref[...]                                   # (1, tn) -> broadcast over B
    fo_ref[...] = (f_ref[...] + enc).astype(fo_ref.dtype)
    a1o_ref[...] = (a1_ref[...] + enc).astype(a1o_ref.dtype)
    a2o_ref[...] = (a2_ref[...] + enc).astype(a2o_ref.dtype)


def _pick_lane_tile(n: int, max_elems: int) -> int:
    """Largest multiple of 128 that divides n and is <= max_elems; else n (full dim)."""
    if n % 128 != 0:
        return n              # not 128-divisible: use the full (valid) dim as one block
    if n <= max_elems:
        return n
    t = (max_elems // 128) * 128
    while t >= 128:
        if n % t == 0:
            return t
        t -= 128
    return n


def pos_encoding_forward(frames, actions1, actions2, pe, d_model,
                         *, target_block_bytes=512 * 1024):
    """frames/actions1/actions2: [B, S, D]; pe: [1, max_len, D]."""
    B, S, D = frames.shape
    assert D == d_model
    dtype = frames.dtype
    itemsize = jnp.dtype(dtype).itemsize
    N = S * D

    # Fold the 1/sqrt(d_model) scale + dtype cast into the table once (outside
    # the hot loop), then flatten everything to a lane-dense 2D layout.
    pe_s = (pe[:, :S] * (1.0 / math.sqrt(d_model))).astype(dtype).reshape(1, N)
    f2 = frames.reshape(B, N)
    a1_2 = actions1.reshape(B, N)
    a2_2 = actions2.reshape(B, N)

    # ~512 KiB per block per stream keeps 7 double-buffered streams inside the
    # default scoped VMEM on every generation (v5e 16 MiB, v6e/v7x 32 MiB).
    max_tn = max(128, target_block_bytes // max(1, B * itemsize))
    tn = _pick_lane_tile(N, max_tn)
    grid = (N // tn,)

    x_spec = pl.BlockSpec((B, tn), lambda i: (0, i))
    pe_spec = pl.BlockSpec((1, tn), lambda i: (0, i))
    out_shape = jax.ShapeDtypeStruct((B, N), dtype)

    cost = pl.CostEstimate(
        flops=3 * B * N,
        transcendentals=0,
        bytes_accessed=6 * B * N * itemsize + N * itemsize,
    )

    f_out, a1_out, a2_out = pl.pallas_call(
        _pos_add_kernel,
        out_shape=(out_shape, out_shape, out_shape),
        grid_spec=pltpu.PrefetchScalarGridSpec(
            num_scalar_prefetch=0,
            grid=grid,
            in_specs=[pe_spec, x_spec, x_spec, x_spec],
            out_specs=[x_spec, x_spec, x_spec],
        ),
        compiler_params=pltpu.CompilerParams(
            dimension_semantics=("parallel",),
            vmem_limit_bytes=32 * 1024 * 1024,
        ),
        cost_estimate=cost,
    )(pe_s, f2, a1_2, a2_2)

    return (f_out.reshape(B, S, D),
            a1_out.reshape(B, S, D),
            a2_out.reshape(B, S, D))


if __name__ == "__main__":
    d_model = 32
    max_len = 16
    batch = 2
    seq = 8

    key = jax.random.PRNGKey(0)
    k1, k2, k3 = jax.random.split(key, 3)
    frames = jax.random.normal(k1, (batch, seq, d_model), dtype=jnp.float32)
    actions1 = jax.random.normal(k2, (batch, seq, d_model), dtype=jnp.float32)
    actions2 = jax.random.normal(k3, (batch, seq, d_model), dtype=jnp.float32)

    pe = _build_pe(d_model, max_len)

    f_out, a1_out, a2_out = pos_encoding_forward(
        frames, actions1, actions2, pe, d_model
    )
    jax.block_until_ready((f_out, a1_out, a2_out))

    # Reference check in plain JAX.
    enc = pe[:, :seq] / math.sqrt(d_model)
    assert jnp.allclose(f_out, frames + enc, atol=1e-6)
    assert jnp.allclose(a1_out, actions1 + enc, atol=1e-6)
    assert jnp.allclose(a2_out, actions2 + enc, atol=1e-6)

    print("KERNEL_OK")
</pallas_src>

<mosaic_0001>
module attributes {stable_mosaic.version = 11 : i64} {
  func.func @_pos_add_kernel(%arg0: i32, %arg1: memref<1x256xf32, #tpu.memory_space<vmem>>, %arg2: memref<2x256xf32, #tpu.memory_space<vmem>>, %arg3: memref<2x256xf32, #tpu.memory_space<vmem>>, %arg4: memref<2x256xf32, #tpu.memory_space<vmem>>, %arg5: memref<2x256xf32, #tpu.memory_space<vmem>>, %arg6: memref<2x256xf32, #tpu.memory_space<vmem>>, %arg7: memref<2x256xf32, #tpu.memory_space<vmem>>) attributes {dimension_semantics = [#tpu.dimension_semantics<parallel>], iteration_bounds = array<i64: 1>, scalar_prefetch = 0 : i64, scratch_operands = 0 : i64, tpu.core_type = #tpu.core_type<tc>, window_params = [{transform_indices = @transform_0, window_bounds = array<i64: 1, 256>}, {transform_indices = @transform_1, window_bounds = array<i64: 2, 256>}, {transform_indices = @transform_2, window_bounds = array<i64: 2, 256>}, {transform_indices = @transform_3, window_bounds = array<i64: 2, 256>}, {transform_indices = @transform_4, window_bounds = array<i64: 2, 256>}, {transform_indices = @transform_5, window_bounds = array<i64: 2, 256>}, {transform_indices = @transform_6, window_bounds = array<i64: 2, 256>}]} {
    %c0 = arith.constant 0 : index
    %c0_0 = arith.constant 0 : index
    %0 = vector.load %arg1[%c0, %c0_0] : memref<1x256xf32, #tpu.memory_space<vmem>>, vector<1x256xf32>
    %c0_1 = arith.constant 0 : index
    %c0_2 = arith.constant 0 : index
    %1 = vector.load %arg2[%c0_1, %c0_2] : memref<2x256xf32, #tpu.memory_space<vmem>>, vector<2x256xf32>
    %2 = vector.broadcast %0 : vector<1x256xf32> to vector<2x256xf32>
    %3 = arith.addf %1, %2 : vector<2x256xf32>
    %c0_3 = arith.constant 0 : index
    %c0_4 = arith.constant 0 : index
    %4 = vector.load %arg5[%c0_3, %c0_4] : memref<2x256xf32, #tpu.memory_space<vmem>>, vector<2x256xf32>
    tpu.vector_store %arg5[%c0_3, %c0_4], %3 {strides = array<i32>} : memref<2x256xf32, #tpu.memory_space<vmem>>, vector<2x256xf32>,
    %c0_5 = arith.constant 0 : index
    %c0_6 = arith.constant 0 : index
    %5 = vector.load %arg3[%c0_5, %c0_6] : memref<2x256xf32, #tpu.memory_space<vmem>>, vector<2x256xf32>
    %6 = vector.broadcast %0 : vector<1x256xf32> to vector<2x256xf32>
    %7 = arith.addf %5, %6 : vector<2x256xf32>
    %c0_7 = arith.constant 0 : index
    %c0_8 = arith.constant 0 : index
    %8 = vector.load %arg6[%c0_7, %c0_8] : memref<2x256xf32, #tpu.memory_space<vmem>>, vector<2x256xf32>
    tpu.vector_store %arg6[%c0_7, %c0_8], %7 {strides = array<i32>} : memref<2x256xf32, #tpu.memory_space<vmem>>, vector<2x256xf32>,
    %c0_9 = arith.constant 0 : index
    %c0_10 = arith.constant 0 : index
    %9 = vector.load %arg4[%c0_9, %c0_10] : memref<2x256xf32, #tpu.memory_space<vmem>>, vector<2x256xf32>
    %10 = vector.broadcast %0 : vector<1x256xf32> to vector<2x256xf32>
    %11 = arith.addf %9, %10 : vector<2x256xf32>
    %c0_11 = arith.constant 0 : index
    %c0_12 = arith.constant 0 : index
    %12 = vector.load %arg7[%c0_11, %c0_12] : memref<2x256xf32, #tpu.memory_space<vmem>>, vector<2x256xf32>
    tpu.vector_store %arg7[%c0_11, %c0_12], %11 {strides = array<i32>} : memref<2x256xf32, #tpu.memory_space<vmem>>, vector<2x256xf32>,
    return
  }
  func.func @transform_0(%arg0: i32) -> (i32, i32) {
    %c0_i32 = arith.constant 0 : i32
    %c0_i32_0 = arith.constant 0 : i32
    return %c0_i32, %arg0 : i32, i32
  }
  func.func @transform_1(%arg0: i32) -> (i32, i32) {
    %c0_i32 = arith.constant 0 : i32
    %c0_i32_0 = arith.constant 0 : i32
    return %c0_i32, %arg0 : i32, i32
  }
  func.func @transform_2(%arg0: i32) -> (i32, i32) {
    %c0_i32 = arith.constant 0 : i32
    %c0_i32_0 = arith.constant 0 : i32
    return %c0_i32, %arg0 : i32, i32
  }
  func.func @transform_3(%arg0: i32) -> (i32, i32) {
    %c0_i32 = arith.constant 0 : i32
    %c0_i32_0 = arith.constant 0 : i32
    return %c0_i32, %arg0 : i32, i32
  }
  func.func @transform_4(%arg0: i32) -> (i32, i32) {
    %c0_i32 = arith.constant 0 : i32
    %c0_i32_0 = arith.constant 0 : i32
    return %c0_i32, %arg0 : i32, i32
  }
  func.func @transform_5(%arg0: i32) -> (i32, i32) {
    %c0_i32 = arith.constant 0 : i32
    %c0_i32_0 = arith.constant 0 : i32
    return %c0_i32, %arg0 : i32, i32
  }
  func.func @transform_6(%arg0: i32) -> (i32, i32) {
    %c0_i32 = arith.constant 0 : i32
    %c0_i32_0 = arith.constant 0 : i32
    return %c0_i32, %arg0 : i32, i32
  }
}

</mosaic_0001>

<bundles_post_ra>
// kernel: tpu_custom_call.1
= control target key start
LH: loop header
LB: loop body
LE: loop exit
PB: predicated region body
PF: predicated region fallthrough
CT: control target
= control target key end

     0   :  { %12 = vsyncpa [#allocation3], 0  ;;  %s392_s0 = inlined_call_operand.hbm [shape: f32[1,256], index: 0, kind: input, shape index: {}]   ;;  %s393_s1 = inlined_call_operand.hbm [shape: f32[2,256], index: 1, kind: input, shape index: {}]   ;;  %s394_s2 = inlined_call_operand.hbm [shape: f32[2,256], index: 2, kind: input, shape index: {}]   ;;  %s395_s3 = inlined_call_operand.hbm [shape: f32[2,256], index: 3, kind: input, shape index: {}]   ;;  %s396_s4 = inlined_call_operand.hbm [shape: f32[2,256], index: 4, kind: output, shape index: {0}]   ;;  %s397_s5 = inlined_call_operand.hbm [shape: f32[2,256], index: 5, kind: output, shape index: {1}]   ;;  %s398_s6 = inlined_call_operand.hbm [shape: f32[2,256], index: 6, kind: output, shape index: {2}]  }
   0x1   :  { %13 = vsyncpa [#allocation6], 0 }
   0x2   :  { %14 = vsyncpa [#allocation9], 0 }
   0x3   :  { %15 = vsyncpa [#allocation4], 0  ;;  %s33_s23 = sshll.u32 %s393_s1, 4  ;;  %s34_s23 = int_to_ptr.hbm [resolvable:$true] %s33_s23 }
   0x4   :  { %16 = vsyncpa [#allocation12], 0  ;;  %s329_s24 = smov [#allocation5]   ;;  %s22_s28 = sshll.u32 %s392_s0, 4  ;;  %s23_s28 = int_to_ptr.hbm [resolvable:$true] %s22_s28 }
   0x5   :  { %s35_s25 = sshll.u32 %s329_s24, 4  ;;  %s330_s29 = smov [#allocation2]   ;;  %s36_s25 = int_to_ptr.vmem [resolvable:$true] %s35_s25 }
   0x6   :  { %38 = dma.hbm_to_vmem [thread:$0]  %s34_s23, 64, %s36_s25, [#allocation6]  }
   0x7   :  { %s24_s30 = sshll.u32 %s330_s29, 4  ;;  %s44_s9 = sshll.u32 %s394_s2, 4  ;;  %s25_s30 = int_to_ptr.vmem [resolvable:$true] %s24_s30  ;;  %s45_s9 = int_to_ptr.hbm [resolvable:$true] %s44_s9 }
   0x8   :  { %27 = dma.hbm_to_vmem [thread:$0]  %s23_s28, 32, %s25_s30, [#allocation3]  }
   0x9   :  { %s55_s11 = sshll.u32 %s395_s3, 4  ;;  %s331_s12 = smov [#allocation7]   ;;  %s56_s11 = int_to_ptr.hbm [resolvable:$true] %s55_s11 }
   0xa   :  { %s46_s13 = sshll.u32 %s331_s12, 4  ;;  %s332_s0 = smov [#allocation8]   ;;  %s47_s13 = int_to_ptr.vmem [resolvable:$true] %s46_s13 }
   0xb   :  { %49 = dma.hbm_to_vmem [thread:$0]  %s45_s9, 64, %s47_s13, [#allocation6]  }
   0xc   :  { %s57_s14 = sshll.u32 %s332_s0, 4  ;;  %s58_s14 = int_to_ptr.vmem [resolvable:$true] %s57_s14 }
   0xd   :  { %60 = dma.hbm_to_vmem [thread:$0]  %s56_s11, 64, %s58_s14, [#allocation9]  }
   0xe   :  { %319 = dma.done.wait [#allocation3], 32  }
   0xf   :  { %320 = vsyncadd [#allocation3], 4294967264 }
  0x10   :  { %321 = dma.done.wait [#allocation6], 128  }
  0x11   :  { %322 = vsyncadd [#allocation6], 4294967168 }
  0x12   :  { %323 = dma.done.wait [#allocation9], 64  }
  0x13   :  { %324 = vsyncadd [#allocation9], 4294967232  ;;  %v77_v0 = vld [vmem:[#allocation2] sm:$0x3]  ;;  %vm83_vm0 = vcmask 1041408   ;;  %s112_s15 = sshll.u32 %s397_s5, 4  ;;  %s113_s15 = int_to_ptr.hbm [resolvable:$true] %s112_s15 }
  0x14   :  { %v80_v1 = vperm.slane %v77_v0, 0  ;;  %v81_v2 = vperm.slane %v77_v0, 1  ;;  %v88_v3 = vld [vmem:[#allocation7] sm:$0xf]  ;;  %v78_v5 = vld [vmem:[#allocation5] sm:$0xf] }
  0x15   :  { %v91_v6 = vld [vmem:[#allocation8] sm:$0xf]  ;;  %s333_s16 = smov [#allocation11]   ;;  %s334_s18 = smov [#allocation10]  }
  0x16   :  { %v82_v4 = vrot.slane %v81_v2, 6  ;;  %s110_s17 = sshll.u32 %s333_s16, 4  ;;  %s99_s19 = sshll.u32 %s334_s18, 4  ;;  %s111_s17 = int_to_ptr.vmem [resolvable:$true] %s110_s17  ;;  %s100_s19 = int_to_ptr.vmem [resolvable:$true] %s99_s19 }
  0x17   :  { %s101_s22 = sshll.u32 %s396_s4, 4  ;;  %s335_s23 = smov [#allocation13]   ;;  %s102_s22 = int_to_ptr.hbm [resolvable:$true] %s101_s22 }
  0x18   :  { %v84_v7 = vsel %vm83_vm0, %v80_v1, %v82_v4  ;;  %s121_s24 = sshll.u32 %s335_s23, 4  ;;  %s123_s27 = sshll.u32 %s398_s6, 4  ;;  %s122_s24 = int_to_ptr.vmem [resolvable:$true] %s121_s24  ;;  %s124_s27 = int_to_ptr.hbm [resolvable:$true] %s123_s27 }
  0x19   :  { %v89_v8 = vadd.f32 %v88_v3, %v84_v7  ;;  %v86_v9 = vadd.f32 %v84_v7, %v78_v5  ;;  %v92_v10 = vadd.f32 %v91_v6, %v84_v7 }
  0x1b   :  { %90 = vst [vmem:[#allocation11] sm:$0xf] %v89_v8 }
  0x1c   :  { %87 = vst [vmem:[#allocation10] sm:$0xf] %v86_v9  ;;  %115 = dma.vmem_to_hbm [thread:$0]  %s111_s17, 64, %s113_s15, [#allocation12]  }
  0x1d   :  { %93 = vst [vmem:[#allocation13] sm:$0xf] %v92_v10  ;;  %104 = dma.vmem_to_hbm [thread:$0]  %s100_s19, 64, %s102_s22, [#allocation4]  }
  0x1e   :  { %126 = dma.vmem_to_hbm [thread:$0]  %s122_s24, 64, %s124_s27, [#allocation12]  }
  0x1f   :  { %325 = dma.done.wait [#allocation4], 64  }
  0x20   :  { %326 = vsyncadd [#allocation4], 4294967232 }
  0x21   :  { %327 = dma.done.wait [#allocation12], 128  }
  0x22   :  { %328 = vsyncadd [#allocation12], 4294967168 }
  0x23   :  { %139 = vsyncpa [#allocation3], 1 }
  0x24   :  { %140 = vsyncpa [#allocation6], 1 }
  0x25   :  { %141 = vsyncpa [#allocation9], 1 }
  0x26   :  { %142 = vsyncpa [#allocation4], 1 }
  0x27   :  { %143 = vsyncpa [#allocation12], 1 }

</bundles_post_ra>
